<compile_context>
chip_gen: v6e
topology: v6e:2x2x1
jax: 0.10.0
libtpu: 0.0.40
codegen_flags: <defaults>
</compile_context>

<pallas_src>
import math
import jax
import jax.numpy as jnp
from jax.experimental import pallas as pl
from jax.experimental.pallas import tpu as pltpu

# ---- problem sizes (small, consistent with the module) ----
B = 2                     # batch
L = 8                     # queries / tokens per batch element
E = 32                    # embed_dim
NUM_CLASSES = 127         # -> num_classes + 1 == 128 (lane-dense output)
C = NUM_CLASSES + 1       # output classes (incl. "no-object" class)
N = B * L                 # total rows processed in the single kernel body


def classifier_kernel(x_ref, wt_ref, b_ref, o_ref):
    x = x_ref[...]                                    # (N, E)
    wt = wt_ref[...]                                  # (E, C) lane-dense weight

    # logits = x @ W^T + b, with the weight already presented as (E, C):
    # a single canonical MXU matmul, f32 accumulation.
    logits = jnp.dot(x, wt, preferred_element_type=jnp.float32)   # (N, C)
    logits = logits + b_ref[...]                      # broadcast (1, C)

    # Numerically-stable softmax over the class axis (exact divide: the
    # kernel is nowhere near VALU-bound, and rows sum to 1 at f32 precision).
    m = jnp.max(logits, axis=-1, keepdims=True)
    e = jnp.exp(logits - m)
    denom = jnp.sum(e, axis=-1, keepdims=True)
    probs = e / denom

    o_ref[...] = probs.astype(o_ref.dtype)


def classifier_forward(x, w, b):
    """x: (B, L, E); w: nn.Linear weight (C, E); b: bias (C,)."""
    x2d = x.reshape(N, E)
    wt = w.T                      # (E, C): transposed once in the wrapper
    b2d = b.reshape(1, C)

    vmem_spec = pl.BlockSpec(memory_space=pltpu.MemorySpace.VMEM)

    out2d = pl.pallas_call(
        classifier_kernel,
        out_shape=jax.ShapeDtypeStruct((N, C), x.dtype),
        in_specs=[vmem_spec, vmem_spec, vmem_spec],   # whole arrays in VMEM,
        out_specs=vmem_spec,                          # no grid / pipelining
    )(x2d, wt, b2d)

    return out2d.reshape(B, L, C)


def classifier_reference(x, w, b):
    """Pure-JAX reference reproducing the PyTorch forward exactly."""
    logits = x @ w.T + b
    return jax.nn.softmax(logits, axis=-1)


if __name__ == "__main__":
    key = jax.random.PRNGKey(0)
    kx, kw, kb = jax.random.split(key, 3)

    # Input embeddings (B, L, E)
    x = jax.random.normal(kx, (B, L, E), dtype=jnp.float32)

    # Deterministic nn.Linear-style params: weight (out, in), bias (out,)
    bound = 1.0 / math.sqrt(E)
    w = jax.random.uniform(kw, (C, E), minval=-bound, maxval=bound,
                           dtype=jnp.float32)
    b = jax.random.uniform(kb, (C,), minval=-bound, maxval=bound,
                           dtype=jnp.float32)

    out = classifier_forward(x, w, b)
    out = jax.block_until_ready(out)

    ref = classifier_reference(x, w, b)
    assert out.shape == (B, L, C)
    assert jnp.allclose(out, ref, atol=1e-5, rtol=1e-5), \
        f"max abs err = {jnp.max(jnp.abs(out - ref))}"
    # Probabilities must sum to 1 along the class axis (exact divide now).
    assert jnp.allclose(jnp.sum(out, axis=-1), 1.0, atol=1e-5)

    print("KERNEL_OK")
</pallas_src>

<mosaic_0001>
module attributes {stable_mosaic.version = 11 : i64} {
  func.func @classifier_kernel(%arg0: memref<16x32xf32, #tpu.memory_space<vmem>>, %arg1: memref<32x128xf32, #tpu.memory_space<vmem>>, %arg2: memref<1x128xf32, #tpu.memory_space<vmem>>, %arg3: memref<16x128xf32, #tpu.memory_space<vmem>>) attributes {dimension_semantics = [], scalar_prefetch = 0 : i64, scratch_operands = 0 : i64, tpu.core_type = #tpu.core_type<tc>} {
    %c0 = arith.constant 0 : index
    %c0_0 = arith.constant 0 : index
    %0 = vector.load %arg0[%c0, %c0_0] : memref<16x32xf32, #tpu.memory_space<vmem>>, vector<16x32xf32>
    %c0_1 = arith.constant 0 : index
    %c0_2 = arith.constant 0 : index
    %1 = vector.load %arg1[%c0_1, %c0_2] : memref<32x128xf32, #tpu.memory_space<vmem>>, vector<32x128xf32>
    %cst = arith.constant dense<0.000000e+00> : vector<16x128xf32>
    %2 = tpu.matmul %0, %1, %cst {dimension_numbers = #tpu.dot_dimension_numbers<[1], [0], [0], [1], [0, 0, 1, 1], [], []>} : vector<16x32xf32>, vector<32x128xf32>, vector<16x128xf32> -> vector<16x128xf32>
    %c0_3 = arith.constant 0 : index
    %c0_4 = arith.constant 0 : index
    %3 = vector.load %arg2[%c0_3, %c0_4] : memref<1x128xf32, #tpu.memory_space<vmem>>, vector<1x128xf32>
    %4 = vector.broadcast %3 : vector<1x128xf32> to vector<16x128xf32>
    %5 = arith.addf %2, %4 : vector<16x128xf32>
    %cst_5 = arith.constant dense<0xFF800000> : vector<16xf32>
    %6 = vector.multi_reduction <maximumf>, %5, %cst_5 [1] : vector<16x128xf32> to vector<16xf32>
    %7 = vector.shape_cast %6 : vector<16xf32> to vector<16x1xf32>
    %8 = vector.broadcast %7 : vector<16x1xf32> to vector<16x128xf32>
    %9 = arith.subf %5, %8 : vector<16x128xf32>
    %10 = math.exp %9 : vector<16x128xf32>
    %cst_6 = arith.constant dense<0.000000e+00> : vector<16xf32>
    %11 = vector.multi_reduction <add>, %10, %cst_6 [1] : vector<16x128xf32> to vector<16xf32>
    %12 = vector.shape_cast %11 : vector<16xf32> to vector<16x1xf32>
    %13 = vector.broadcast %12 : vector<16x1xf32> to vector<16x128xf32>
    %14 = arith.divf %10, %13 : vector<16x128xf32>
    %c0_7 = arith.constant 0 : index
    %c0_8 = arith.constant 0 : index
    %15 = vector.load %arg3[%c0_7, %c0_8] : memref<16x128xf32, #tpu.memory_space<vmem>>, vector<16x128xf32>
    tpu.vector_store %arg3[%c0_7, %c0_8], %14 {strides = array<i32>} : memref<16x128xf32, #tpu.memory_space<vmem>>, vector<16x128xf32>,
    return
  }
}

</mosaic_0001>

<bundles_post_ra>
// kernel: tpu_custom_call.1
= control target key start
LH: loop header
LB: loop body
LE: loop exit
PB: predicated region body
PF: predicated region fallthrough
CT: control target
= control target key end

     0   :  { %8 = vsyncpa [#allocation3], 0  ;;  %s323_s0 = inlined_call_operand.hbm [shape: f32[16,32], index: 0, kind: input, shape index: {}]   ;;  %s324_s1 = inlined_call_operand.hbm [shape: f32[32,128], index: 1, kind: input, shape index: {}]   ;;  %s325_s2 = inlined_call_operand.vmem [shape: f32[1,128], index: 2, kind: input, shape index: {}]   ;;  %s326_s3 = inlined_call_operand.hbm [shape: f32[16,128], index: 3, kind: output, shape index: {}]  }
   0x1   :  { %9 = vsyncpa [#allocation6], 0 }
   0x2   :  { %10 = vsyncpa [#allocation4], 0  ;;  %s275_s12 = smov [#allocation2]  }
   0x3   :  { %s16_s13 = sshll.u32 %s275_s12, 4  ;;  %s17_s13 = int_to_ptr.vmem [resolvable:$true] %s16_s13 }
   0x4   :  { %s217_s14 = scalar_lea.vmem %s17_s13, 256  ;;  %p222_p1 = scmp.lt.s32.totalorder %s17_s13, %s17_s13 }
   0x5   :  { %p218_p0 = scmp.ne.s32.totalorder %s17_s13, %s217_s14  ;;  %p223_p2 = scmp.lt.s32.totalorder %s217_s14, %s217_s14 }
   0x7   :  { %p224_p3 = por %p223_p2, %p222_p1 }
   0x9   :  { %p225_p4 = pnand %p224_p3, %p218_p0 }
   0xb   :  { %228 = shalt.err (!%p225_p4)
}
   0xc   :  { %s276_s15 = smov 128   ;;  %s277_s16 = smov 8  }
   0xd   :  { %22 = dma.hbm_to_vmem [thread:$0]  %s323_s0, 256, %s17_s13, [#allocation3], %s276_s15, %s276_s15, %s277_s16  }
   0xe   :  { %s278_s19 = smov [#allocation5]  }
   0xf   :  { %s28_s20 = sshll.u32 %s278_s19, 4  ;;  %s29_s20 = int_to_ptr.vmem [resolvable:$true] %s28_s20 }
  0x10   :  { %s237_s21 = scalar_lea.vmem %s29_s20, 512  ;;  %p242_p6 = scmp.lt.s32.totalorder %s29_s20, %s29_s20 }
  0x11   :  { %p238_p5 = scmp.ne.s32.totalorder %s29_s20, %s237_s21  ;;  %p243_p7 = scmp.lt.s32.totalorder %s237_s21, %s237_s21 }
  0x13   :  { %p244_p8 = por %p243_p7, %p242_p6 }
  0x15   :  { %p245_p9 = pnand %p244_p8, %p238_p5 }
  0x17   :  { %248 = shalt.err (!%p245_p9)
}
  0x18   :  { %34 = dma.hbm_to_vmem [thread:$0]  %s324_s1, 512, %s29_s20, [#allocation6], %s276_s15, %s276_s15, %s277_s16  }
  0x19   :  { %269 = dma.done.wait [#allocation3], 256  }
  0x1a   :  { %270 = vsyncadd [#allocation3], 4294967040 }
  0x1b   :  { %271 = dma.done.wait [#allocation6], 512  }
  0x1c   :  { %272 = vsyncadd [#allocation6], 4294966784  ;;  %vm56_vm0 = vcmask 261120   ;;  %v48_v0 = vld [vmem:[#allocation5 + $0x18] sm:$0xff]  ;;  %v47_v1 = vld [vmem:[#allocation5 + $0x10] sm:$0xff] }
  0x1d   :  { %185 = vmatprep.subr.mxu0 %v48_v0  ;;  %v43_v2 = vld [vmem:[#allocation2] sm:$0xff]  ;;  %v46_v3 = vld [vmem:[#allocation5 + $0x8] sm:$0xff]  ;;  %v45_v4 = vld [vmem:[#allocation5] sm:$0xff] }
  0x1e   :  { %186 = vmatpush3.msra.mxu0 %v48_v0  ;;  %193 = vmatprep.mubr.msk.f32.mxu0 %vm56_vm0, %v43_v2  ;;  %v44_v5 = vld [vmem:[#allocation2 + $0x8] sm:$0xff]  ;;  %v176_v7 = vld [vmem:[%s325_s2] ss:$0 sm:$0xff]  ;;  %s279_s2 = smov [#allocation7]  }
  0x1f   :  { %187 = vmatprep.subr.mxu0 %v47_v1  ;;  %s163_s24 = sshll.u32 %s279_s2, 4  ;;  %s164_s24 = int_to_ptr.vmem [resolvable:$true] %s163_s24 }
  0x20   :  { %188 = vmatpush3.msra.mxu0 %v47_v1  ;;  %s249_s25 = scalar_lea.vmem %s164_s24, 256  ;;  %p254_p11 = scmp.lt.s32.totalorder %s164_s24, %s164_s24 }
  0x21   :  { %189 = vmatprep.subr.mxu0 %v46_v3  ;;  %p250_p10 = scmp.ne.s32.totalorder %s164_s24, %s249_s25  ;;  %p255_p12 = scmp.lt.s32.totalorder %s249_s25, %s249_s25 }
  0x22   :  { %190 = vmatpush3.msra.mxu0 %v46_v3 }
  0x23   :  { %191 = vmatprep.subr.mxu0 %v45_v4  ;;  %p256_p13 = por %p255_p12, %p254_p11 }
  0x24   :  { %192 = vmatpush3.msra.mxu0 %v45_v4 }
  0x25   :  { %194 = vmatmul.mubr.msk.f32.vlgmr.msra.gmra.mxu0 %vm56_vm0, %v44_v5  ;;  %p257_p0 = pnand %p256_p13, %p250_p10 }
  0xe5   :  { %v195_v6 = vpop.f32.mrf.mxu0 }
  0xe6   :  { %v135_v10 = vadd.f32 %v195_v6, %v176_v7 }
  0xe7   :  { %v129_v8 = vpop.f32.mrf.mxu0 }
  0xe8   :  { %v130_v9 = vadd.f32 %v176_v7, %v129_v8 }
  0xea   :  { %138 = vmax.xlane.f32.xlu0 %v130_v9 }
  0xee   :  { %140 = vmax.xlane.f32.xlu0 %v135_v10 }
 0x173   :  { %v139_v11 = vpop.xlane.xlu0 %138 }
 0x174   :  { %v142_v12 = vsub.f32 %v130_v9, %v139_v11 }
 0x176   :  { %v144_v13 = vmul.f32 1.442695, %v142_v12 }
 0x177   :  { %v141_v14 = vpop.xlane.xlu0 %140 }
 0x178   :  { %201 = vpow2.f32 %v144_v13  ;;  %v143_v15 = vsub.f32 %v135_v10, %v141_v14 }
 0x17a   :  { %v146_v16 = vmul.f32 1.442695, %v143_v15 }
 0x17c   :  { %203 = vpow2.f32 %v146_v16 }
 0x185   :  { %v202_v17 = vpop.eup %201 }
 0x186   :  { %148 = vadd.xlane.f32.xlu1 %v202_v17 }
 0x189   :  { %v204_v18 = vpop.eup %203 }
 0x18a   :  { %150 = vadd.xlane.f32.xlu1 %v204_v18 }
 0x20f   :  { %v149_v19 = vpop.xlane.xlu1 %148 }
 0x210   :  { %205 = vrcp.f32 %v149_v19 }
 0x213   :  { %v151_v20 = vpop.xlane.xlu1 %150 }
 0x214   :  { %207 = vrcp.f32 %v151_v20 }
 0x21d   :  { %v206_v21 = vpop.eup %205 }
 0x21e   :  { %v153_v22 = vmul.f32 %v206_v21, %v202_v17 }
 0x220   :  { %156 = vst [vmem:[#allocation7] sm:$0xff] %v153_v22 }
 0x221   :  { %v208_v23 = vpop.eup %207 }
 0x222   :  { %v155_v24 = vmul.f32 %v208_v23, %v204_v18 }
 0x224   :  { %157 = vst [vmem:[#allocation7 + $0x8] sm:$0xff] %v155_v24 }
 0x225   :  { %260 = shalt.err (!%p257_p0)
}
 0x226   :  { %169 = dma.vmem_to_hbm [thread:$0]  %s164_s24, 256, %s326_s3, [#allocation4], %s276_s15, %s276_s15, %s277_s16  }
 0x227   :  { %273 = dma.done.wait [#allocation4], 256  }
 0x228   :  { %274 = vsyncadd [#allocation4], 4294967040 }
 0x229   :  { %173 = vsyncpa [#allocation3], 1 }
 0x22a   :  { %174 = vsyncpa [#allocation6], 1 }
 0x22b   :  { %175 = vsyncpa [#allocation4], 1 }

</bundles_post_ra>
